<compile_context>
chip_gen: v7x
topology: tpu7x:2x2x1
jax: 0.10.0
libtpu: 0.0.40
codegen_flags: <defaults>
</compile_context>

<pallas_src>
import jax
import jax.numpy as jnp
from jax.experimental import pallas as pl
from jax.experimental.pallas import tpu as pltpu


def _round_up(x, m):
    return (x + m - 1) // m * m


def _pick_tm(n_rows, bytes_per_row, budget_bytes, resident_bytes):
    """Largest row tile (multiple of 8, <= 512) fitting the VMEM budget."""
    avail = budget_bytes - resident_bytes - (2 << 20)  # headroom for scratch
    tm = max(8, avail // max(bytes_per_row, 1))
    tm = max(8, min(512, (tm // 8) * 8))
    n_p8 = _round_up(max(n_rows, 1), 8)
    tm = min(tm, n_p8)
    # Keep >= 2 row-grid steps when there is more than one tile of work so the
    # "parallel" row axis can shard across v7x's two TensorCores.
    if n_p8 > 8 and n_p8 // tm < 2:
        tm = max(8, _round_up(pl.cdiv(n_p8, 2), 8))
    return tm


# ---------------------------------------------------------------------------
# Fast path: weight resident in VMEM, single-axis row grid.
# ---------------------------------------------------------------------------
def res_dense_kernel(alpha_ref, x_ref, w_ref, b_ref, o_ref):
    # alpha_ref: (1,) f32 in SMEM
    # x_ref:     (tm, width_p) VMEM row tile
    # w_ref:     (width_p, width_p) VMEM, pre-transposed (in x out), resident
    # b_ref:     (1, width_p) VMEM, resident
    # o_ref:     (tm, width_p) VMEM row tile
    alpha = alpha_ref[0]
    x = x_ref[...]
    acc = jnp.dot(x, w_ref[...], preferred_element_type=jnp.float32)
    ab = alpha * b_ref[...]                      # scale bias on the small tile
    out = jnp.maximum(x.astype(jnp.float32) + alpha * acc + ab, 0.0)
    o_ref[...] = out.astype(o_ref.dtype)


# ---------------------------------------------------------------------------
# Tiled path: (rows, N, K) grid with f32 accumulator scratch (large width).
# ---------------------------------------------------------------------------
def res_dense_tiled_kernel(alpha_ref, x_ref, xres_ref, w_ref, b_ref, o_ref, acc_ref):
    # x_ref:    (tm, tk)  matmul operand tile (row block i, K block k)
    # xres_ref: (tm, tn)  residual tile      (row block i, N block j)
    # w_ref:    (tk, tn)  pre-transposed weight tile
    # b_ref:    (1, tn)   bias tile
    # acc_ref:  (tm, tn)  f32 accumulator scratch
    k = pl.program_id(2)

    @pl.when(k == 0)
    def _():
        acc_ref[...] = jnp.zeros_like(acc_ref)

    acc_ref[...] += jnp.dot(x_ref[...], w_ref[...],
                            preferred_element_type=jnp.float32)

    @pl.when(k == pl.num_programs(2) - 1)
    def _():
        alpha = alpha_ref[0]
        out = (xres_ref[...].astype(jnp.float32)
               + alpha * acc_ref[...] + alpha * b_ref[...])
        o_ref[...] = jnp.maximum(out, 0.0).astype(o_ref.dtype)


def res_dense_layer(x, weight, bias, alpha, *, tm=None, tk=None, tn=None,
                    vmem_limit_bytes=48 << 20,
                    max_resident_weight_bytes=16 << 20,
                    force_tiled=False):
    """x: (..., width). weight: (width, width) as in nn.Linear (out, in).
    bias: (width,). alpha: scalar / shape-(1,) array."""
    orig_shape = x.shape
    width = orig_shape[-1]
    x2 = x.reshape(-1, width)
    n = x2.shape[0]

    # Lane-dense layout: pad the feature dim to a multiple of 128 so output
    # stores are unmasked full-lane vst and MXU/vreg lanes are fully used.
    # Zero padding is exact for this op (padded cols stay 0, sliced off).
    width_p = _round_up(width, 128)
    alpha = jnp.asarray(alpha, jnp.float32).reshape(1)

    tiled = force_tiled or (width_p * width_p * 4 > max_resident_weight_bytes)

    if not tiled:
        # --- resident-weight fast path ------------------------------------
        resident = width_p * width_p * 4 + 2 * width_p * 4
        per_row = 4 * width_p * 4                 # x + out, double-buffered, f32
        if tm is None:
            tm = _pick_tm(n, per_row, vmem_limit_bytes, resident)
        n_p = _round_up(max(n, tm), tm)

        xp = jnp.zeros((n_p, width_p), x.dtype).at[:n, :width].set(x2)
        wp = jnp.zeros((width_p, width_p), weight.dtype).at[:width, :width].set(weight.T)
        bp = jnp.zeros((1, width_p), bias.dtype).at[0, :width].set(bias)

        out = pl.pallas_call(
            res_dense_kernel,
            out_shape=jax.ShapeDtypeStruct((n_p, width_p), x.dtype),
            grid_spec=pltpu.PrefetchScalarGridSpec(
                num_scalar_prefetch=0,
                grid=(n_p // tm,),
                in_specs=[
                    pl.BlockSpec(memory_space=pltpu.MemorySpace.SMEM),
                    pl.BlockSpec((tm, width_p), lambda i: (i, 0)),
                    # weight/bias: constant index_map -> resident; single-buffer.
                    pl.BlockSpec((width_p, width_p), lambda i: (0, 0),
                                 pipeline_mode=pl.Buffered(1)),
                    pl.BlockSpec((1, width_p), lambda i: (0, 0),
                                 pipeline_mode=pl.Buffered(1)),
                ],
                out_specs=pl.BlockSpec((tm, width_p), lambda i: (i, 0)),
            ),
            compiler_params=pltpu.CompilerParams(
                dimension_semantics=("parallel",),
                vmem_limit_bytes=vmem_limit_bytes,
            ),
        )(alpha, xp, wp, bp)
        return out[:n, :width].reshape(orig_shape)

    # --- K/N-tiled accumulator path ----------------------------------------
    if tn is None:
        tn = 512 if width_p % 512 == 0 else (256 if width_p % 256 == 0 else 128)
    if tk is None:
        tk = tn
    # Per-row VMEM: x(tk) + xres(tn) + out(tn), double-buffered, f32, plus acc(tn).
    per_row = 2 * (tk + 2 * tn) * 4 + tn * 4
    resident = 2 * (tk * tn + tn) * 4             # weight + bias tiles (dbl-buf)
    if tm is None:
        tm = _pick_tm(n, per_row, vmem_limit_bytes, resident)
    n_p = _round_up(max(n, tm), tm)

    xp = jnp.zeros((n_p, width_p), x.dtype).at[:n, :width].set(x2)
    wp = jnp.zeros((width_p, width_p), weight.dtype).at[:width, :width].set(weight.T)
    bp = jnp.zeros((1, width_p), bias.dtype).at[0, :width].set(bias)

    grid = (n_p // tm, width_p // tn, width_p // tk)
    out = pl.pallas_call(
        res_dense_tiled_kernel,
        out_shape=jax.ShapeDtypeStruct((n_p, width_p), x.dtype),
        grid_spec=pltpu.PrefetchScalarGridSpec(
            num_scalar_prefetch=0,
            grid=grid,
            in_specs=[
                pl.BlockSpec(memory_space=pltpu.MemorySpace.SMEM),
                pl.BlockSpec((tm, tk), lambda i, j, k: (i, k)),   # matmul operand
                pl.BlockSpec((tm, tn), lambda i, j, k: (i, j)),   # residual
                pl.BlockSpec((tk, tn), lambda i, j, k: (k, j)),   # weight (K,N)
                pl.BlockSpec((1, tn), lambda i, j, k: (0, j)),    # bias
            ],
            out_specs=pl.BlockSpec((tm, tn), lambda i, j, k: (i, j)),
            scratch_shapes=[pltpu.VMEM((tm, tn), jnp.float32)],
        ),
        compiler_params=pltpu.CompilerParams(
            dimension_semantics=("parallel", "parallel", "arbitrary"),
            vmem_limit_bytes=vmem_limit_bytes,
        ),
    )(alpha, xp, xp, wp, bp)
    return out[:n, :width].reshape(orig_shape)


def reference(x, weight, bias, alpha):
    a = jnp.asarray(alpha).reshape(())
    y = a * (jnp.matmul(x, weight.T, precision=jax.lax.Precision.HIGHEST) + bias)
    return jnp.maximum(x + y, 0.0)


if __name__ == "__main__":
    key = jax.random.PRNGKey(0)
    batch, seq, width = 2, 8, 32          # small shapes consistent with the module
    k1, k2, k3 = jax.random.split(key, 3)

    x = jax.random.normal(k1, (batch, seq, width), dtype=jnp.float32)
    bound = 1.0 / jnp.sqrt(width)
    weight = jax.random.uniform(k2, (width, width), jnp.float32, -bound, bound)
    bias = jax.random.uniform(k3, (width,), jnp.float32, -bound, bound)
    alpha = jnp.zeros((1,), jnp.float32)   # module initializes alpha = 0

    out = jax.block_until_ready(res_dense_layer(x, weight, bias, alpha))
    ref = reference(x, weight, bias, alpha)
    assert out.shape == x.shape
    assert jnp.allclose(out, ref, atol=1e-5, rtol=1e-5)

    # Nonzero alpha exercises the matmul path.
    alpha2 = jnp.array([0.5], jnp.float32)
    out2 = jax.block_until_ready(res_dense_layer(x, weight, bias, alpha2))
    ref2 = reference(x, weight, bias, alpha2)
    assert jnp.allclose(out2, ref2, atol=1e-5, rtol=1e-5)

    # Ragged row count (not a multiple of the row tile) exercises the padding path.
    x3 = jax.random.normal(k1, (13, width), dtype=jnp.float32)
    out3 = jax.block_until_ready(res_dense_layer(x3, weight, bias, alpha2))
    ref3 = reference(x3, weight, bias, alpha2)
    assert out3.shape == x3.shape
    assert jnp.allclose(out3, ref3, atol=1e-5, rtol=1e-5)

    # K/N-tiled accumulator path (forced; would normally engage at large width).
    width4 = 256
    k4, k5, k6 = jax.random.split(jax.random.PRNGKey(1), 3)
    x4 = jax.random.normal(k4, (batch, seq, width4), dtype=jnp.float32)
    bound4 = 1.0 / jnp.sqrt(width4)
    w4 = jax.random.uniform(k5, (width4, width4), jnp.float32, -bound4, bound4)
    b4 = jax.random.uniform(k6, (width4,), jnp.float32, -bound4, bound4)
    out4 = jax.block_until_ready(
        res_dense_layer(x4, w4, b4, alpha2, tk=128, tn=128, force_tiled=True))
    ref4 = reference(x4, w4, b4, alpha2)
    assert out4.shape == x4.shape
    assert jnp.allclose(out4, ref4, atol=1e-4, rtol=1e-4)

    print("KERNEL_OK")
</pallas_src>

<mosaic_0001>
module attributes {stable_mosaic.version = 11 : i64} {
  func.func @res_dense_kernel(%arg0: i32, %arg1: memref<1xf32, #tpu.memory_space<smem>>, %arg2: memref<8x128xf32, #tpu.memory_space<vmem>>, %arg3: memref<128x128xf32, #tpu.memory_space<vmem>>, %arg4: memref<1x128xf32, #tpu.memory_space<vmem>>, %arg5: memref<8x128xf32, #tpu.memory_space<vmem>>) attributes {dimension_semantics = [#tpu.dimension_semantics<parallel>], iteration_bounds = array<i64: 2>, scalar_prefetch = 0 : i64, scratch_operands = 0 : i64, tpu.core_type = #tpu.core_type<tc>, window_params = [{transform_indices = @transform_0, window_bounds = array<i64: 1>}, {transform_indices = @transform_1, window_bounds = array<i64: 8, 128>}, {pipeline_mode = #tpu.pipeline_mode<synchronous>, transform_indices = @transform_2, window_bounds = array<i64: 128, 128>}, {pipeline_mode = #tpu.pipeline_mode<synchronous>, transform_indices = @transform_3, window_bounds = array<i64: 1, 128>}, {transform_indices = @transform_4, window_bounds = array<i64: 8, 128>}]} {
    %c0 = arith.constant 0 : index
    %0 = memref.load %arg1[%c0] : memref<1xf32, #tpu.memory_space<smem>>
    %c0_0 = arith.constant 0 : index
    %c0_1 = arith.constant 0 : index
    %1 = vector.load %arg2[%c0_0, %c0_1] : memref<8x128xf32, #tpu.memory_space<vmem>>, vector<8x128xf32>
    %c0_2 = arith.constant 0 : index
    %c0_3 = arith.constant 0 : index
    %2 = vector.load %arg3[%c0_2, %c0_3] : memref<128x128xf32, #tpu.memory_space<vmem>>, vector<128x128xf32>
    %cst = arith.constant dense<0.000000e+00> : vector<8x128xf32>
    %3 = tpu.matmul %1, %2, %cst {dimension_numbers = #tpu.dot_dimension_numbers<[1], [0], [0], [1], [0, 0, 1, 1], [], []>} : vector<8x128xf32>, vector<128x128xf32>, vector<8x128xf32> -> vector<8x128xf32>
    %c0_4 = arith.constant 0 : index
    %c0_5 = arith.constant 0 : index
    %4 = vector.load %arg4[%c0_4, %c0_5] : memref<1x128xf32, #tpu.memory_space<vmem>>, vector<1x128xf32>
    %5 = vector.broadcast %0 : f32 to vector<1x128xf32>
    %6 = arith.mulf %5, %4 : vector<1x128xf32>
    %7 = vector.broadcast %0 : f32 to vector<8x128xf32>
    %8 = arith.mulf %7, %3 : vector<8x128xf32>
    %9 = arith.addf %1, %8 : vector<8x128xf32>
    %10 = vector.broadcast %6 : vector<1x128xf32> to vector<8x128xf32>
    %11 = arith.addf %9, %10 : vector<8x128xf32>
    %cst_6 = arith.constant 0.000000e+00 : f32
    %12 = vector.broadcast %cst_6 : f32 to vector<8x128xf32>
    %13 = arith.maximumf %11, %12 : vector<8x128xf32>
    %c0_7 = arith.constant 0 : index
    %c0_8 = arith.constant 0 : index
    %14 = vector.load %arg5[%c0_7, %c0_8] : memref<8x128xf32, #tpu.memory_space<vmem>>, vector<8x128xf32>
    tpu.vector_store %arg5[%c0_7, %c0_8], %13 {strides = array<i32>} : memref<8x128xf32, #tpu.memory_space<vmem>>, vector<8x128xf32>,
    return
  }
  func.func @transform_0(%arg0: i32) -> i32 {
    %c0_i32 = arith.constant 0 : i32
    %c0_i32_0 = arith.constant 0 : i32
    return %c0_i32 : i32
  }
  func.func @transform_1(%arg0: i32) -> (i32, i32) {
    %c0_i32 = arith.constant 0 : i32
    %c0_i32_0 = arith.constant 0 : i32
    return %arg0, %c0_i32 : i32, i32
  }
  func.func @transform_2(%arg0: i32) -> (i32, i32) {
    %c0_i32 = arith.constant 0 : i32
    %c0_i32_0 = arith.constant 0 : i32
    %c0_i32_1 = arith.constant 0 : i32
    return %c0_i32, %c0_i32_0 : i32, i32
  }
  func.func @transform_3(%arg0: i32) -> (i32, i32) {
    %c0_i32 = arith.constant 0 : i32
    %c0_i32_0 = arith.constant 0 : i32
    %c0_i32_1 = arith.constant 0 : i32
    return %c0_i32, %c0_i32_0 : i32, i32
  }
  func.func @transform_4(%arg0: i32) -> (i32, i32) {
    %c0_i32 = arith.constant 0 : i32
    %c0_i32_0 = arith.constant 0 : i32
    return %arg0, %c0_i32 : i32, i32
  }
}

</mosaic_0001>

<bundles_post_ra>
// kernel: tpu_custom_call.1
= control target key start
LH: loop header
LB: loop body
LE: loop exit
PB: predicated region body
PF: predicated region fallthrough
CT: control target
= control target key end

     0   :  { %s949_s0 = inlined_call_operand.<no memory space> [shape: f32[1], index: 0, kind: input, shape index: {}]   ;;  %s950_s1 = inlined_call_operand.hbm [shape: f32[16,128], index: 1, kind: input, shape index: {}]   ;;  %s951_s2 = inlined_call_operand.hbm [shape: f32[128,128], index: 2, kind: input, shape index: {}]   ;;  %s952_s3 = inlined_call_operand.vmem [shape: f32[1,128], index: 3, kind: input, shape index: {}]   ;;  %s953_s4 = inlined_call_operand.hbm [shape: f32[16,128], index: 4, kind: output, shape index: {}]  }
   0x1   :  { %9 = sst [smem:[#allocation2]] %s949_s0 }
   0x2   :  { %10 = vsyncpa [#allocation4], 0 }
   0x3   :  { %12 = vsyncpa [#allocation4 + $0x1], 0 }
   0x4   :  { %13 = vsyncpa [#allocation7], 0 }
   0x5   :  { %14 = vsyncpa [#allocation5], 0 }
   0x6   :  { %16 = vsyncpa [#allocation5 + $0x1], 0  ;;  %s743_s17 = smov 0   ;;  %s745_s18 = smov 0  }
   0x7   :  { %s747_s19 = smov 0   ;;  %s749_s20 = smov 0  }
   0x8 LB: > { %s764_s0 = sadd.s32 4294967295, %s705_s20   ;;  %s425_s21 = sadd.s32 4294967294, %s705_s20   ;;  %s705_s20 = sphi %s749_s20, %s973_s20   ;;  %s701_s19 = sphi %s747_s19, %s972_s19   ;;  %s697_s18 = sphi %s745_s18, %s971_s18   ;;  %s693_s17 = sphi %s743_s17, %s970_s17  }
   0x9   : > { %p63_p0 = scmp.ne.s32.totalorder %s697_s18, %s693_s17  ;;  %p954_p1 = scmp.eq.s32.totalorder %s764_s0, 0 }
   0xa   : > { %p135_p3 = scmp.eq.s32.totalorder %s425_s21, 1  ;;  %p426_p5 = scmp.ge.s32.totalorder %s705_s20, 1 }
   0xb   : > { %p773_p4 = por %p954_p1, %p63_p0  ;;  %p142_p7 = scmp.lt.s32.totalorder %s705_s20, 3 }
   0xc   : > { %p778_p6 = por %p135_p3, %p63_p0  ;;  %s707_s25 = smov [#allocation6]  }
   0xd   : > { %s957_s22 = scalar_select %p773_p4, 1, 0 }
   0xe   : > { %s958_s23 = scalar_select %p778_p6, 1, 0 }
   0xf   : > { %p783_p8 = pnand %p426_p5, %p142_p7  ;;  %s157_s26 = sshll.u32 %s707_s25, 4  ;;  %s787_s26 = int_to_ptr.vmem [resolvable:$true] %s157_s26 }
  0x10   : > { %s799_s28 = sadd.s32 1, %s705_s20   ;;  %s50_s29 = sadd.s32 1, %s701_s19 }
  0x11   : > { %s959_s24 = scalar_select %p783_p8, 1, 0 }
  0x12   : > { %p523_p9 = pneg %p783_p8  ;;  %s47_s30 = ssub.s32 %s705_s20, %s799_s28 }
  0x13   : > { %s577_s7 = scalar_lea.hbm %s951_s2, 2048 }
  0x14   : > { %p794_p11 = pnand %p523_p9, %p954_p1  ;;  %p578_p12 = scmp.ne.s32.totalorder %s951_s2, %s577_s7 }
  0x15   : > { %p584_p5 = scmp.lt.u32.totalorder %s577_s7, %s951_s2 }
  0x16   : > { %p579_p13 = pneg %p794_p11 }
  0x18   : > { %p580_p0 = pnand %p579_p13, %p578_p12 }
  0x1a   : > { %p581_p3 = pneg %p580_p0 }
  0x1c   : > { %p586_p7 = pnand %p584_p5, %p581_p3 }
  0x1e   : > { %589 = shalt.err (!%p586_p7)
}
  0x1f   : > { %s590_s12 = scalar_lea.vmem %s787_s26, 2048  ;;  %p598_p2 = scmp.lt.s32.totalorder %s787_s26, %s787_s26 }
  0x20   : > { %p591_p9 = scmp.ne.s32.totalorder %s787_s26, %s590_s12  ;;  %p599_p6 = scmp.lt.s32.totalorder %s590_s12, %s590_s12 }
  0x22   : > { %p593_p10 = pnand %p591_p9, %p579_p13  ;;  %p600_p4 = por %p599_p6, %p598_p2 }
  0x24   : > { %p594_p1 = pneg %p593_p10 }
  0x26   : > { %p601_p8 = pnand %p600_p4, %p594_p1 }
  0x28   : > { %604 = shalt.err (!%p601_p8)
}
  0x29   : > { %s708_s13 = smov 128   ;;  %s709_s14 = smov 8  }
  0x2a   : > { %526 = dma.hbm_to_vmem [thread:$0]  (!%p794_p11), %s951_s2, 2048, %s787_s26, [#allocation7], %s708_s13, %s708_s13, %s709_s14  }
  0x2b   : > { %p48_p2 = scmp.eq.s32.totalorder %s47_s30, 0  ;;  %p57_p1 = scmp.ne.s32.totalorder %s701_s19, %s697_s18 }
  0x2c   : > { %p58_p4 = scmp.eq.s32.totalorder %s705_s20, 0  ;;  %p536_p6 = scmp.lt.s32.totalorder %s705_s20, 2 }
  0x2d   : > { %s830_s21 = scalar_select %p48_p2, %s701_s19, %s50_s29  }
  0x2e   : > { %p59_p8 = por %p58_p4, %p57_p1  ;;  %p961_p10 = scmp.eq.s32.totalorder %s764_s0, 1 }
  0x2f   : > { %s174_s5 = sand.u32 1, %s701_s19   ;;  %s430_s6 = sshll.u32 %s705_s20, 7 }
  0x30   : > { %p834_p12 = por %p961_p10, %p57_p1  ;;  %s429_s7 = sshll.u32 %s174_s5, 3 }
  0x31   : > { %s843_s9 = scalar_lea.hbm %s950_s1, %s430_s6  ;;  %s178_s26 = scalar_lea.vmem [#allocation3], %s429_s7 }
  0x32   : > { %s185_s29 = sshll.u32 %s178_s26, 4  ;;  %p845_p11 = pnand %p536_p6, %p59_p8  ;;  %s849_s29 = int_to_ptr.vmem [resolvable:$true] %s185_s29 }
  0x33   : > { %s175_s10 = scalar_lea.sflag [#allocation4], %s174_s5  ;;  %s605_s11 = scalar_lea.hbm %s843_s9, 128 }
  0x34   : > { %p606_p13 = scmp.ne.s32.totalorder %s843_s9, %s605_s11  ;;  %p607_p0 = pneg %p845_p11 }
  0x35   : > { %s610_s14 = scalar_lea.hbm %s950_s1, 256  ;;  %p611_p7 = scmp.lt.u32.totalorder %s843_s9, %s950_s1 }
  0x36   : > { %p608_p3 = pnand %p607_p0, %p606_p13  ;;  %p612_p9 = scmp.lt.u32.totalorder %s610_s14, %s605_s11 }
  0x37   : > { %p614_p1 = scmp.lt.u32.totalorder %s605_s11, %s843_s9 }
  0x38   : > { %p609_p5 = pneg %p608_p3  ;;  %p613_p2 = por %p612_p9, %p611_p7 }
  0x3a   : > { %p615_p4 = por %p614_p1, %p613_p2 }
  0x3c   : > { %p616_p6 = pnand %p615_p4, %p609_p5 }
  0x3e   : > { %619 = shalt.err (!%p616_p6)
}
  0x3f   : > { %s620_s5 = scalar_lea.vmem %s849_s29, 128  ;;  %s710_s6 = smov [#allocation3]  }
  0x40   : > { %p621_p8 = scmp.ne.s32.totalorder %s849_s29, %s620_s5  ;;  %s625_s7 = sshll.u32 %s710_s6, 4  ;;  %s626_s7 = int_to_ptr.vmem [resolvable:$false] %s625_s7 }
  0x41   : > { %s627_s27 = scalar_lea.vmem %s626_s7, 256  ;;  %p628_p3 = scmp.lt.s32.totalorder %s849_s29, %s626_s7 }
  0x42   : > { %p623_p10 = pnand %p621_p8, %p607_p0  ;;  %p629_p7 = scmp.lt.s32.totalorder %s627_s27, %s620_s5 }
  0x44   : > { %p624_p13 = pneg %p623_p10  ;;  %p630_p9 = por %p629_p7, %p628_p3 }
  0x46   : > { %p631_p2 = pnand %p630_p9, %p624_p13 }
  0x48   : > { %634 = shalt.err (!%p631_p2)
}
  0x49   : > { %530 = dma.hbm_to_vmem [thread:$0]  (!%p845_p11), %s843_s9, 128, %s849_s29, %s175_s10  }
  0x4a   : > { %p964_p5 = scmp.ne.s32.totalorder %s959_s24, 0 }
  0x4b   : > { %s879_s8 = sand.u32 (!%p964_p5), 1, %s697_s18   ;;  %p965_p0 = scmp.ne.s32.totalorder (!%p964_p5), %s957_s22, 0 }
  0x4c   : > { %194 = sbr.rel (%p964_p5) target bundleno = 355 (0x163), region = 36  ;;  %s432_s26 = sshll.u32 (!%p964_p5), %s879_s8, 3 }
  0x4d   : > { %s197_s11 = scalar_lea.sflag (!%p964_p5), [#allocation4], %s879_s8  ;;  %s885_s12 = scalar_lea.vmem (!%p964_p5), [#allocation3], %s432_s26 }
  0x53   : > { %680 = dma.done.wait (%p965_p0), %s197_s11, 128  }
  0x54   : > { %682 = vsyncadd (%p965_p0), %s197_s11, 4294967168  ;;  %p966_p11 = scmp.eq.s32.totalorder %s764_s0, 0 }
  0x56   : > { %684 = dma.done.wait (%p966_p11), [#allocation7], 2048   ;;  %p967_p1 = pmov %p966_p11 }
  0x57   : > { %v711_v0 = vmov 0.0|0.0   ;;  %vm712_vm0 = vmmov 0   ;;  %v713_v1 = vmov 0.0   ;;  %v231_v2 = vld [vmem:[#allocation6] sm:$0xff]  ;;  %v232_v3 = vld [vmem:[#allocation6 + $0x8] sm:$0xff]  ;;  %v233_v4 = vld [vmem:[#allocation6 + $0x10] sm:$0xff]  ;;  %v323_v27 = vlaneseq }
  0x58   : > { %686 = vsyncadd (%p967_p1), [#allocation7], 4294965248  ;;  %491 = vmatprep.subr.bf16.mxu0 %v711_v0  ;;  %488 = vmatprep.mubr.msk.f32.mxu0 %vm712_vm0, %v713_v1  ;;  %v492_v5 = vpack.c.bf16 %v232_v3, %v231_v2  ;;  %v234_v6 = vld [vmem:[#allocation6 + $0x18] sm:$0xff]  ;;  %v235_v8 = vld [vmem:[#allocation6 + $0x20] sm:$0xff]  ;;  %s229_s22 = sld [smem:[#allocation2]]  ;;  %s436_s29 = sshll.u32 %s764_s0, 7 }
  0x59   : > { %v495_v7 = vpack.c.bf16 %v234_v6, %v233_v4  ;;  %v236_v9 = vld [vmem:[#allocation6 + $0x28] sm:$0xff]  ;;  %v237_v11 = vld [vmem:[#allocation6 + $0x30] sm:$0xff]  ;;  %v238_v12 = vld [vmem:[#allocation6 + $0x38] sm:$0xff]  ;;  %v324_v28 = vshrl.u32 %v323_v27, 7  ;;  %s228_s30 = scalar_lea.vmem [#allocation8], %s432_s26  ;;  %s905_s15 = scalar_lea.hbm %s953_s4, %s436_s29 }
  0x5a   : > { %493 = vmatpush3.bf16.msra.mxu0 %v492_v5  ;;  %v498_v10 = vpack.c.bf16 %v236_v9, %v235_v8  ;;  %v501_v13 = vpack.c.bf16 %v238_v12, %v237_v11  ;;  %v239_v14 = vld [vmem:[#allocation6 + $0x40] sm:$0xff]  ;;  %v240_v15 = vld [vmem:[#allocation6 + $0x48] sm:$0xff]  ;;  %v241_v17 = vld [vmem:[#allocation6 + $0x50] sm:$0xff]  ;;  %s345_s10 = sshll.u32 %s228_s30, 4  ;;  %s332_s16 = scalar_lea.sflag [#allocation5], %s879_s8  ;;  %s907_s10 = int_to_ptr.vmem [resolvable:$true] %s345_s10 }
  0x5b   : > { %494 = vmatprep.subr.bf16.mxu0 %v711_v0  ;;  %v504_v16 = vpack.c.bf16 %v240_v15, %v239_v14  ;;  %v242_v18 = vld [vmem:[#allocation6 + $0x58] sm:$0xff]  ;;  %v243_v20 = vld [vmem:[#allocation6 + $0x60] sm:$0xff]  ;;  %v244_v21 = vld [vmem:[#allocation6 + $0x68] sm:$0xff]  ;;  %v325_v32 = vsub.s32 0, %v324_v28  ;;  %s635_s5 = scalar_lea.vmem %s907_s10, 128  ;;  %s714_s0 = smov [#allocation8]  }
  0x5c   : > { %v507_v19 = vpack.c.bf16 %v242_v18, %v241_v17  ;;  %v510_v22 = vpack.c.bf16 %v244_v21, %v243_v20  ;;  %v245_v23 = vld [vmem:[#allocation6 + $0x70] sm:$0xff]  ;;  %v246_v24 = vld [vmem:[#allocation6 + $0x78] sm:$0xff]  ;;  %p636_p4 = scmp.ne.s32.totalorder %s907_s10, %s635_s5  ;;  %s639_s6 = sshll.u32 %s714_s0, 4  ;;  %s640_s6 = int_to_ptr.vmem [resolvable:$false] %s639_s6 }
  0x5d   : > { %v513_v25 = vpack.c.bf16 %v246_v24, %v245_v23  ;;  %v230_v26 = vld [vmem:[%s885_s12] sm:$0xff]  ;;  %s641_s7 = scalar_lea.vmem %s640_s6, 256  ;;  %p642_p10 = scmp.lt.s32.totalorder %s907_s10, %s640_s6 }
  0x5e   : > { %496 = vmatpush3.bf16.msra.mxu0 %v495_v7  ;;  %v317_v29 = vld [vmem:[%s952_s3] sm:$0x1]  ;;  %v318_v30 = vstv %s229_s22  ;;  %p637_p6 = pnand %p636_p4, %p834_p12  ;;  %p643_p13 = scmp.lt.s32.totalorder %s641_s7, %s635_s5 }
  0x5f   : > { %497 = vmatprep.subr.bf16.mxu0 %v711_v0  ;;  %v319_v31 = vmul.f32 %v318_v30, %v317_v29 }
  0x60   : > { %p638_p8 = pneg %p637_p6  ;;  %p644_p3 = por %p643_p13, %p642_p10 }
  0x61   : > { %v326_v35 = vrot.slane %v319_v31, %v325_v32 }
  0x62   : > { %499 = vmatpush3.bf16.msra.mxu0 %v498_v10  ;;  %p645_p7 = pnand %p644_p3, %p638_p8 }
  0x63   : > { %500 = vmatprep.subr.bf16.mxu0 %v711_v0 }
  0x66   : > { %502 = vmatpush3.bf16.msra.mxu0 %v501_v13 }
  0x67   : > { %503 = vmatprep.subr.bf16.mxu0 %v711_v0 }
  0x6a   : > { %505 = vmatpush3.bf16.msra.mxu0 %v504_v16 }
  0x6b   : > { %506 = vmatprep.subr.bf16.mxu0 %v711_v0 }
  0x6e   : > { %508 = vmatpush3.bf16.msra.mxu0 %v507_v19 }
  0x6f   : > { %509 = vmatprep.subr.bf16.mxu0 %v711_v0 }
  0x72   : > { %511 = vmatpush3.bf16.msra.mxu0 %v510_v22 }
  0x73   : > { %512 = vmatprep.subr.bf16.mxu0 %v711_v0 }
  0x76   : > { %514 = vmatpush3.bf16.msra.mxu0 %v513_v25 }
  0x79   : > { %489 = vmatmul.mubr.f32.vlgmr.msra.gmra.mrb[0].mxu0 %v230_v26 }
 0x14c   : > { %v313_v33 = vpop.f32.mrb[0].mxu0 }
 0x14d   : > { %v320_v34 = vmul.f32 %v318_v30, %v313_v33  ;;  %v490_v36 = vpop.f32.mrb[1].mxu0 }
 0x14f   : > { %v321_v37 = vadd.f32 %v320_v34, %v230_v26 }
 0x151   : > { %v328_v38 = vadd.f32 %v326_v35, %v321_v37 }
 0x153   : > { %v329_v39 = vmax.f32 %v328_v38, 0.0 }
 0x155   : > { %330 = vst [vmem:[%s228_s30] sm:$0xff] %v329_v39 }
 0x156   : > { %648 = shalt.err (!%p645_p7)
}
 0x157   : > { %s649_s27 = scalar_lea.hbm %s905_s15, 128  ;;  %s653_s11 = scalar_lea.hbm %s953_s4, 256 }
 0x158   : > { %p650_p9 = scmp.ne.s32.totalorder %s905_s15, %s649_s27  ;;  %p654_p0 = scmp.lt.u32.totalorder %s905_s15, %s953_s4 }
 0x159   : > { %p655_p11 = scmp.lt.u32.totalorder %s653_s11, %s649_s27  ;;  %p657_p4 = scmp.lt.u32.totalorder %s649_s27, %s905_s15 }
 0x15a   : > { %p651_p2 = pnand %p650_p9, %p834_p12 }
 0x15b   : > { %p656_p1 = por %p655_p11, %p654_p0 }
 0x15c   : > { %p652_p5 = pneg %p651_p2 }
 0x15d   : > { %p658_p6 = por %p657_p4, %p656_p1 }
 0x15f   : > { %p659_p8 = pnand %p658_p6, %p652_p5 }
 0x161   : > { %662 = shalt.err (!%p659_p8)
}
 0x162   : > { %521 = dma.vmem_to_hbm [thread:$0]  (%p834_p12), %s907_s10, 128, %s905_s15, %s332_s16  }
 0x163 PF: > { %s357_s24 = sand.u32 1, %s693_s17   ;;  %p968_p10 = scmp.ne.s32.totalorder %s958_s23, 0 }
 0x164   : > { %p969_p13 = scmp.ge.s32.totalorder %s705_s20, 2  ;;  %s358_s9 = scalar_lea.sflag [#allocation5], %s357_s24 }
 0x166   : > { %p532_p3 = pnand %p969_p13, %p968_p10 }
 0x168   : > { %688 = dma.done.wait (!%p532_p3), %s358_s9, 128  }
 0x169   : > { %690 = vsyncadd (!%p532_p3), %s358_s9, 4294967168  ;;  %p19_p7 = scmp.ge.s32.totalorder %s799_s28, 4   ;;  %s970_s17 = smov %s697_s18 }
 0x16a   : > { %s971_s18 = smov %s701_s19  ;;  %s972_s19 = smov %s830_s21 }
 0x16b   : > { %s973_s20 = smov %s799_s28  ;;  %21 = sbr.rel (!%p19_p7) target bundleno = 8 (0x8), region = 85 }
 0x172   :  { %363 = vsyncpa [#allocation4], 1 }
 0x173   :  { %365 = vsyncpa [#allocation4 + $0x1], 1 }
 0x174   :  { %366 = vsyncpa [#allocation7], 1 }
 0x175   :  { %367 = vsyncpa [#allocation5], 1 }
 0x176   :  { %369 = vsyncpa [#allocation5 + $0x1], 1 }

</bundles_post_ra>
